<compile_context>
chip_gen: v7x
topology: tpu7x:2x2x1
jax: 0.10.0
libtpu: 0.0.40
codegen_flags: <defaults>
</compile_context>

<pallas_src>
import jax
import jax.numpy as jnp
from jax.experimental import pallas as pl
from jax.experimental.pallas import tpu as pltpu

NEG_SLOPE = 0.01  # torch.nn.LeakyReLU default negative_slope


def _leaky_relu(x):
    return jnp.where(x > 0, x, NEG_SLOPE * x)


def mlp_kernel(x_ref, w1_ref, b1_ref, w2_ref, b2_ref, w3_ref, b3_ref, o_ref):
    # x_ref: (F, TB) with batch on lanes; weights (out, in); biases (out, 1)
    # broadcasting over the lane axis.
    x = x_ref[...]
    h = jnp.dot(w1_ref[...], x, preferred_element_type=jnp.float32) + b1_ref[...]
    h = _leaky_relu(h)
    h = jnp.dot(w2_ref[...], h, preferred_element_type=jnp.float32) + b2_ref[...]
    h = _leaky_relu(h)
    out = jnp.dot(w3_ref[...], h, preferred_element_type=jnp.float32) + b3_ref[...]
    o_ref[...] = out.astype(o_ref.dtype)


def ann_forward(x, params, *, tb=8192):
    """x: (B, size) float32 -> (B, 1) float32.

    params: dict with w{i}: (out, in) (PyTorch-native layout) and b{i}: (out, 1)
    column vectors (so the kernel's W @ x + b broadcasts over lanes).
    tb: batch tile (lanes per grid step); forced to a multiple of 128 and
    clamped to the (padded) batch.
    """
    B, F = x.shape
    w1, b1 = params["w1"], params["b1"]
    w2, b2 = params["w2"], params["b2"]
    w3, b3 = params["w3"], params["b3"]

    # Batch tile: multiple of the 128-lane width, clamped to the padded batch.
    tb = max(128, (tb // 128) * 128)
    b_lane = ((B + 127) // 128) * 128
    tb = min(tb, b_lane)
    b_pad = ((b_lane + tb - 1) // tb) * tb

    # Layout plumbing in the wrapper: batch onto the lane axis (+ zero pad).
    x_t = x.T  # (F, B)
    if b_pad != B:
        x_t = jnp.pad(x_t, ((0, 0), (0, b_pad - B)))

    grid = (b_pad // tb,)
    resident = lambda a: pl.BlockSpec(a.shape, lambda i: (0, 0))  # VMEM-resident

    # Advisory cost hint: memory-bound elementwise-ish op over b_pad rows.
    h1, h2 = w1.shape[0], w2.shape[0]
    flops = 2 * b_pad * (F * h1 + h1 * h2 + h2 * 1)
    bytes_accessed = 4 * (F * b_pad + b_pad) + 4 * sum(
        a.size for a in (w1, b1, w2, b2, w3, b3)
    )

    out = pl.pallas_call(
        mlp_kernel,
        out_shape=jax.ShapeDtypeStruct((1, b_pad), jnp.float32),
        grid_spec=pltpu.PrefetchScalarGridSpec(
            num_scalar_prefetch=0,
            grid=grid,
            in_specs=[
                pl.BlockSpec((F, tb), lambda i: (0, i)),  # lane-dense x tile
                resident(w1), resident(b1),
                resident(w2), resident(b2),
                resident(w3), resident(b3),
            ],
            out_specs=pl.BlockSpec((1, tb), lambda i: (0, i)),
        ),
        compiler_params=pltpu.CompilerParams(
            dimension_semantics=("parallel",),  # megacore sharding on v7x
        ),
        cost_estimate=pl.CostEstimate(
            flops=flops, transcendentals=0, bytes_accessed=bytes_accessed
        ),
    )(x_t, w1, b1, w2, b2, w3, b3)

    return out[:, :B].T  # (B, 1)


def init_params(key, size=3, mid=(30, 10)):
    """Deterministic init matching the PyTorch layer shapes.

    Weights in PyTorch-native (out, in) layout; biases as (out, 1) column
    vectors so the kernel's W @ x + b broadcasts over the lane axis.
    """
    layer_size = [size] + list(mid) + [1]
    params = {}
    for i in range(len(layer_size) - 1):
        fan_in, fan_out = layer_size[i], layer_size[i + 1]
        key, kw, kb = jax.random.split(key, 3)
        bound = 1.0 / jnp.sqrt(fan_in)
        w = jax.random.uniform(kw, (fan_out, fan_in), jnp.float32, -bound, bound)
        b = jax.random.uniform(kb, (fan_out, 1), jnp.float32, -bound, bound)
        params[f"w{i + 1}"] = w
        params[f"b{i + 1}"] = b
    return params


def ann_reference(x, params):
    h = x @ params["w1"].T + params["b1"].T
    h = jnp.where(h > 0, h, NEG_SLOPE * h)
    h = h @ params["w2"].T + params["b2"].T
    h = jnp.where(h > 0, h, NEG_SLOPE * h)
    return h @ params["w3"].T + params["b3"].T


if __name__ == "__main__":
    key = jax.random.PRNGKey(0)
    key, kx = jax.random.split(key)
    B, SIZE = 512, 3
    x = jax.random.normal(kx, (B, SIZE), jnp.float32)
    params = init_params(key, size=SIZE)

    # tb=128 so the small test still exercises a multi-step "parallel" grid
    # (weights resident across steps, x/out tiles streamed).
    out = ann_forward(x, params, tb=128)
    out = jax.block_until_ready(out)

    ref = ann_reference(x, params)
    assert out.shape == (B, 1), out.shape
    assert jnp.allclose(out, ref, atol=1e-5, rtol=1e-5), (out, ref)
    print("KERNEL_OK")
</pallas_src>

<mosaic_0001>
module attributes {stable_mosaic.version = 11 : i64} {
  func.func @mlp_kernel(%arg0: i32, %arg1: memref<3x128xf32, #tpu.memory_space<vmem>>, %arg2: memref<30x3xf32, #tpu.memory_space<vmem>>, %arg3: memref<30x1xf32, #tpu.memory_space<vmem>>, %arg4: memref<10x30xf32, #tpu.memory_space<vmem>>, %arg5: memref<10x1xf32, #tpu.memory_space<vmem>>, %arg6: memref<1x10xf32, #tpu.memory_space<vmem>>, %arg7: memref<1x1xf32, #tpu.memory_space<vmem>>, %arg8: memref<1x128xf32, #tpu.memory_space<vmem>>) attributes {dimension_semantics = [#tpu.dimension_semantics<parallel>], iteration_bounds = array<i64: 4>, scalar_prefetch = 0 : i64, scratch_operands = 0 : i64, tpu.core_type = #tpu.core_type<tc>, window_params = [{transform_indices = @transform_0, window_bounds = array<i64: 3, 128>}, {pipeline_mode = #tpu.pipeline_mode<synchronous>, transform_indices = @transform_1, window_bounds = array<i64: 30, 3>}, {pipeline_mode = #tpu.pipeline_mode<synchronous>, transform_indices = @transform_2, window_bounds = array<i64: 30, 1>}, {pipeline_mode = #tpu.pipeline_mode<synchronous>, transform_indices = @transform_3, window_bounds = array<i64: 10, 30>}, {pipeline_mode = #tpu.pipeline_mode<synchronous>, transform_indices = @transform_4, window_bounds = array<i64: 10, 1>}, {pipeline_mode = #tpu.pipeline_mode<synchronous>, transform_indices = @transform_5, window_bounds = array<i64: 1, 10>}, {pipeline_mode = #tpu.pipeline_mode<synchronous>, transform_indices = @transform_6, window_bounds = array<i64: 1, 1>}, {transform_indices = @transform_7, window_bounds = array<i64: 1, 128>}]} {
    %c0 = arith.constant 0 : index
    %c0_0 = arith.constant 0 : index
    %0 = vector.load %arg1[%c0, %c0_0] : memref<3x128xf32, #tpu.memory_space<vmem>>, vector<3x128xf32>
    %c0_1 = arith.constant 0 : index
    %c0_2 = arith.constant 0 : index
    %1 = vector.load %arg2[%c0_1, %c0_2] : memref<30x3xf32, #tpu.memory_space<vmem>>, vector<30x3xf32>
    %cst = arith.constant dense<0.000000e+00> : vector<30x128xf32>
    %2 = tpu.matmul %1, %0, %cst {dimension_numbers = #tpu.dot_dimension_numbers<[1], [0], [0], [1], [0, 0, 1, 1], [], []>} : vector<30x3xf32>, vector<3x128xf32>, vector<30x128xf32> -> vector<30x128xf32>
    %c0_3 = arith.constant 0 : index
    %c0_4 = arith.constant 0 : index
    %3 = vector.load %arg3[%c0_3, %c0_4] : memref<30x1xf32, #tpu.memory_space<vmem>>, vector<30x1xf32>
    %4 = vector.broadcast %3 : vector<30x1xf32> to vector<30x128xf32>
    %5 = arith.addf %2, %4 : vector<30x128xf32>
    %cst_5 = arith.constant 0.000000e+00 : f32
    %6 = vector.broadcast %cst_5 : f32 to vector<30x128xf32>
    %7 = arith.cmpf ogt, %5, %6 : vector<30x128xf32>
    %cst_6 = arith.constant 0.00999999977 : f32
    %8 = vector.broadcast %cst_6 : f32 to vector<30x128xf32>
    %9 = arith.mulf %8, %5 : vector<30x128xf32>
    %10 = arith.select %7, %5, %9 : vector<30x128xi1>, vector<30x128xf32>
    %c0_7 = arith.constant 0 : index
    %c0_8 = arith.constant 0 : index
    %11 = vector.load %arg4[%c0_7, %c0_8] : memref<10x30xf32, #tpu.memory_space<vmem>>, vector<10x30xf32>
    %cst_9 = arith.constant dense<0.000000e+00> : vector<10x128xf32>
    %12 = tpu.matmul %11, %10, %cst_9 {dimension_numbers = #tpu.dot_dimension_numbers<[1], [0], [0], [1], [0, 0, 1, 1], [], []>} : vector<10x30xf32>, vector<30x128xf32>, vector<10x128xf32> -> vector<10x128xf32>
    %c0_10 = arith.constant 0 : index
    %c0_11 = arith.constant 0 : index
    %13 = vector.load %arg5[%c0_10, %c0_11] : memref<10x1xf32, #tpu.memory_space<vmem>>, vector<10x1xf32>
    %14 = vector.broadcast %13 : vector<10x1xf32> to vector<10x128xf32>
    %15 = arith.addf %12, %14 : vector<10x128xf32>
    %cst_12 = arith.constant 0.000000e+00 : f32
    %16 = vector.broadcast %cst_12 : f32 to vector<10x128xf32>
    %17 = arith.cmpf ogt, %15, %16 : vector<10x128xf32>
    %cst_13 = arith.constant 0.00999999977 : f32
    %18 = vector.broadcast %cst_13 : f32 to vector<10x128xf32>
    %19 = arith.mulf %18, %15 : vector<10x128xf32>
    %20 = arith.select %17, %15, %19 : vector<10x128xi1>, vector<10x128xf32>
    %c0_14 = arith.constant 0 : index
    %c0_15 = arith.constant 0 : index
    %21 = vector.load %arg6[%c0_14, %c0_15] : memref<1x10xf32, #tpu.memory_space<vmem>>, vector<1x10xf32>
    %cst_16 = arith.constant dense<0.000000e+00> : vector<1x128xf32>
    %22 = tpu.matmul %21, %20, %cst_16 {dimension_numbers = #tpu.dot_dimension_numbers<[1], [0], [0], [1], [0, 0, 1, 1], [], []>} : vector<1x10xf32>, vector<10x128xf32>, vector<1x128xf32> -> vector<1x128xf32>
    %c0_17 = arith.constant 0 : index
    %c0_18 = arith.constant 0 : index
    %23 = vector.load %arg7[%c0_17, %c0_18] : memref<1x1xf32, #tpu.memory_space<vmem>>, vector<1x1xf32>
    %24 = vector.broadcast %23 : vector<1x1xf32> to vector<1x128xf32>
    %25 = arith.addf %22, %24 : vector<1x128xf32>
    %c0_19 = arith.constant 0 : index
    %c0_20 = arith.constant 0 : index
    %26 = vector.load %arg8[%c0_19, %c0_20] : memref<1x128xf32, #tpu.memory_space<vmem>>, vector<1x128xf32>
    tpu.vector_store %arg8[%c0_19, %c0_20], %25 {strides = array<i32>} : memref<1x128xf32, #tpu.memory_space<vmem>>, vector<1x128xf32>,
    return
  }
  func.func @transform_0(%arg0: i32) -> (i32, i32) {
    %c0_i32 = arith.constant 0 : i32
    %c0_i32_0 = arith.constant 0 : i32
    return %c0_i32, %arg0 : i32, i32
  }
  func.func @transform_1(%arg0: i32) -> (i32, i32) {
    %c0_i32 = arith.constant 0 : i32
    %c0_i32_0 = arith.constant 0 : i32
    %c0_i32_1 = arith.constant 0 : i32
    return %c0_i32, %c0_i32_0 : i32, i32
  }
  func.func @transform_2(%arg0: i32) -> (i32, i32) {
    %c0_i32 = arith.constant 0 : i32
    %c0_i32_0 = arith.constant 0 : i32
    %c0_i32_1 = arith.constant 0 : i32
    return %c0_i32, %c0_i32_0 : i32, i32
  }
  func.func @transform_3(%arg0: i32) -> (i32, i32) {
    %c0_i32 = arith.constant 0 : i32
    %c0_i32_0 = arith.constant 0 : i32
    %c0_i32_1 = arith.constant 0 : i32
    return %c0_i32, %c0_i32_0 : i32, i32
  }
  func.func @transform_4(%arg0: i32) -> (i32, i32) {
    %c0_i32 = arith.constant 0 : i32
    %c0_i32_0 = arith.constant 0 : i32
    %c0_i32_1 = arith.constant 0 : i32
    return %c0_i32, %c0_i32_0 : i32, i32
  }
  func.func @transform_5(%arg0: i32) -> (i32, i32) {
    %c0_i32 = arith.constant 0 : i32
    %c0_i32_0 = arith.constant 0 : i32
    %c0_i32_1 = arith.constant 0 : i32
    return %c0_i32, %c0_i32_0 : i32, i32
  }
  func.func @transform_6(%arg0: i32) -> (i32, i32) {
    %c0_i32 = arith.constant 0 : i32
    %c0_i32_0 = arith.constant 0 : i32
    %c0_i32_1 = arith.constant 0 : i32
    return %c0_i32, %c0_i32_0 : i32, i32
  }
  func.func @transform_7(%arg0: i32) -> (i32, i32) {
    %c0_i32 = arith.constant 0 : i32
    %c0_i32_0 = arith.constant 0 : i32
    return %c0_i32, %arg0 : i32, i32
  }
}

</mosaic_0001>

<bundles_post_ra>
// kernel: tpu_custom_call.1
= control target key start
LH: loop header
LB: loop body
LE: loop exit
PB: predicated region body
PF: predicated region fallthrough
CT: control target
= control target key end

     0   :  { %s1060_s0 = inlined_call_operand.vmem [shape: f32[3,512], index: 0, kind: input, shape index: {}]   ;;  %s1061_s1 = inlined_call_operand.vmem [shape: f32[30,3], index: 1, kind: input, shape index: {}]   ;;  %s1062_s2 = inlined_call_operand.vmem [shape: f32[30,1], index: 2, kind: input, shape index: {}]   ;;  %s1063_s3 = inlined_call_operand.vmem [shape: f32[10,30], index: 3, kind: input, shape index: {}]   ;;  %s1064_s4 = inlined_call_operand.vmem [shape: f32[10,1], index: 4, kind: input, shape index: {}]   ;;  %s1065_s5 = inlined_call_operand.vmem [shape: f32[1,10], index: 5, kind: input, shape index: {}]   ;;  %s1066_s6 = inlined_call_operand.<no memory space> [shape: f32[1,1], index: 6, kind: input, shape index: {}]   ;;  %s1067_s7 = inlined_call_operand.hbm [shape: f32[1,512], index: 7, kind: output, shape index: {}]  }
   0x1   :  { %v12_v0 = vstv %s1066_s6 }
   0x2   :  { %13 = vst [vmem:[#allocation2] sm:$0x1] %v12_v0 }
   0x3   :  { %14 = vsyncpa [#allocation4], 0 }
   0x4   :  { %16 = vsyncpa [#allocation4 + $0x1], 0  ;;  %s913_s26 = smov 0   ;;  %s915_s27 = smov 0  }
   0x5   :  { %s917_s28 = smov 0   ;;  %s919_s29 = smov 0  }
   0x6 LB: > { %s934_s6 = sadd.s32 4294967295, %s862_s29   ;;  %s682_s30 = sadd.s32 4294967294, %s862_s29   ;;  %s862_s29 = sphi %s919_s29, %s1073_s29   ;;  %s858_s28 = sphi %s917_s28, %s1072_s28   ;;  %s854_s27 = sphi %s915_s27, %s1071_s27   ;;  %s850_s26 = sphi %s913_s26, %s1070_s26  }
   0x7   : > { %s938_s8 = sadd.s32 1, %s862_s29   ;;  %s181_s9 = sadd.s32 1, %s858_s28 }
   0x8   : > { %s178_s10 = ssub.s32 %s862_s29, %s938_s8  ;;  %p191_p0 = scmp.ne.s32.totalorder %s858_s28, %s854_s27 }
   0x9   : > { %p179_p1 = scmp.eq.s32.totalorder %s178_s10, 0  ;;  %p192_p2 = scmp.eq.s32.totalorder %s934_s6, 3 }
   0xa   : > { %p197_p3 = scmp.ne.s32.totalorder %s854_s27, %s850_s26  ;;  %p198_p4 = scmp.eq.s32.totalorder %s682_s30, 3 }
   0xb   : > { %s949_s11 = scalar_select %p179_p1, %s858_s28, %s181_s9  }
   0xc   : > { %p951_p5 = por %p192_p2, %p191_p0  ;;  %p955_p6 = por %p198_p4, %p197_p3 }
   0xd   : > { %p685_p7 = scmp.ge.s32.totalorder %s862_s29, 1  ;;  %p241_p8 = scmp.lt.s32.totalorder %s862_s29, 5 }
   0xf   : > { %p242_p9 = pnand %p685_p7, %p241_p8 }
  0x10   : > { %p271_p10 = scmp.lt.s32.totalorder (!%p242_p9), %s934_s6, 3  ;;  %v276_v1 = vld [vmem:[%s1061_s1] sm:$0xff] (!%p242_p9)  ;;  %vm304_vm0 = vcmask (!%p242_p9), 23552   ;;  %v864_v3 = vmov (!%p242_p9), 0   ;;  %v282_v4 = vld [vmem:[%s1062_s2 + $0x10] sm:$0xff] (!%p242_p9)  ;;  %vm317_vm1 = vcmask (!%p242_p9), 1042432   ;;  %v531_v52 = vlaneseq (!%p242_p9) }
  0x11   : > { %245 = sbr.rel (%p242_p9) target bundleno = 710 (0x2c6), region = 48  ;;  %716 = vmatprep.mubr.msk.f32.mxu0 (!%p242_p9), %vm304_vm0, %v276_v1  ;;  %v280_v2 = vld [vmem:[%s1062_s2] sm:$0xff] (!%p242_p9)  ;;  %798 = vset.pattern.permute.xlu0 (!%p242_p9), %v864_v3  ;;  %v281_v5 = vld [vmem:[%s1062_s2 + $0x8] sm:$0xff] (!%p242_p9)  ;;  %v283_v6 = vld [vmem:[%s1062_s2 + $0x18] sm:$0x3f] (!%p242_p9)  ;;  %vm432_vm2 = vcmask (!%p242_p9), 244736  }
  0x12   : > { %799 = vset.pattern.permute.xlu1 (!%p242_p9), %v864_v3  ;;  %286 = vperm.xlu0 (!%p242_p9), %798, %v280_v2   ;;  %v277_v8 = vld [vmem:[%s1061_s1 + $0x8] sm:$0xff] (!%p242_p9)  ;;  %v278_v9 = vld [vmem:[%s1061_s1 + $0x10] sm:$0xff] (!%p242_p9)  ;;  %v420_v10 = vld [vmem:[%s1064_s4] sm:$0xff] (!%p242_p9)  ;;  %vm439_vm5 = vcmask (!%p242_p9), 1045504   ;;  %vm865_vm8 = vmmov (!%p242_p9), 1   ;;  %v866_v38 = vmov (!%p242_p9), 0.0|0.0  }
  0x13   : > { %296 = vperm.xlu1 (!%p242_p9), %799, %v282_v4   ;;  %v421_v11 = vld [vmem:[%s1064_s4 + $0x8] sm:$0x3] (!%p242_p9)  ;;  %v279_v12 = vld [vmem:[%s1061_s1 + $0x18] sm:$0x3f] (!%p242_p9)  ;;  %v525_v13 = vld [vmem:[#allocation2] sm:$0x1] (!%p242_p9) }
  0x14   : > { %v418_v14 = vld [vmem:[%s1063_s3] sm:$0xff] (!%p242_p9)  ;;  %vm745_vm9 = vmpackc.low (!%p242_p9), %vm439_vm5, %vm865_vm8  ;;  %v419_v37 = vld [vmem:[%s1063_s3 + $0x8] sm:$0x3] (!%p242_p9)  ;;  %vm867_vm10 = vmmov (!%p242_p9), 0   ;;  %v868_v39 = vmov (!%p242_p9), 0.0   ;;  %vm539_vm11 = vcmask (!%p242_p9), 1041408  }
  0x15   : > { %730 = vmatprep.mubr.msk.f32.mxu1 (!%p242_p9), %vm432_vm2, %v418_v14  ;;  %vm752_vm14 = vmpackc.low (!%p242_p9), %vm539_vm11, %vm865_vm8  ;;  %v524_v51 = vld [vmem:[%s1065_s5] sm:$0x1] (!%p242_p9)  ;;  %vm535_vm15 = vcmask (!%p242_p9), 80896   ;;  %v532_v53 = vshrl.u32 (!%p242_p9), %v531_v52, 7  ;;  %s269_s15 = sand.u32 (!%p242_p9), 1, %s854_s27   ;;  %s697_s16 = sshll.u32 (!%p242_p9), %s934_s6, 4 }
  0x16   : > { %291 = vperm.xlu0 (!%p242_p9), %798, %v281_v5   ;;  %s270_s17 = scalar_lea.vmem (!%p242_p9), [#allocation3], %s269_s15  ;;  %s615_s22 = scalar_lea.sflag (!%p242_p9), [#allocation4], %s269_s15 }
  0x17   : > { %301 = vperm.xlu1 (!%p242_p9), %799, %v283_v6   ;;  %v533_v54 = vsub.s32 (!%p242_p9), 0, %v532_v53 }
  0x18   : > { %s272_s18 = scalar_select %p271_p10, %s934_s6, 3 }
  0x19   : > { %s869_s6 = smov [#allocation3]  }
  0x1a   : > { %s686_s21 = sshll.u32 %s272_s18, 2  ;;  %424 = vperm.xlu0 %798, %v420_v10   ;;  %s627_s18 = sshll.u32 %s270_s17, 4  ;;  %s1020_s18 = int_to_ptr.vmem [resolvable:$true] %s627_s18 }
  0x1b   : > { %s274_s30 = scalar_lea.vmem %s1060_s0, %s686_s21  ;;  %429 = vperm.xlu1 %799, %v421_v11   ;;  %s1018_s21 = scalar_lea.hbm %s1067_s7, %s697_s16 }
  0x1c   : > { %v275_v7 = vld [vmem:[%s274_s30] sm:$0x7]  ;;  %s800_s23 = scalar_lea.vmem %s1020_s18, 16  ;;  %s804_s24 = sshll.u32 %s869_s6, 4  ;;  %s805_s24 = int_to_ptr.vmem [resolvable:$false] %s804_s24 }
  0x1d   : > { %714 = vmatprep.subr.msk.mxu0 %vm317_vm1, %v275_v7  ;;  %p801_p11 = scmp.ne.s32.totalorder %s1020_s18, %s800_s23  ;;  %s806_s25 = scalar_lea.vmem %s805_s24, 32 }
  0x1e   : > { %715 = vmatpush3.msk.msra.mxu0 %vm317_vm1, %v275_v7  ;;  %528 = vperm.xlu0 %798, %v525_v13   ;;  %p807_p0 = scmp.lt.s32.totalorder %s1020_s18, %s805_s24  ;;  %p808_p1 = scmp.lt.s32.totalorder %s806_s25, %s800_s23 }
  0x1f   : > { %717 = vmatmul.mubr.msk.f32.vlgmr.msra.gmra.mrb[0].mxu0 %vm304_vm0, %v277_v8  ;;  %750 = vmatprep.subr.bf16.mxu0 %v866_v38  ;;  %p802_p12 = pnand %p801_p11, %p951_p5 }
  0x20   : > { %719 = vmatprep.mubr.msk.f32.mxu0 %vm304_vm0, %v278_v9  ;;  %p809_p2 = por %p808_p1, %p807_p0 }
  0x21   : > { %p803_p13 = pneg %p802_p12 }
  0x23   : > { %720 = vmatmul.mubr.msk.f32.gmra.mrb[2].mxu0 %vm304_vm0, %v279_v12  ;;  %p810_p3 = pnand %p809_p2, %p803_p13 }
  0x24   : > { %737 = vmatprep.mubr.msk.f32.mxu0 %vm867_vm10, %v868_v39 }
  0x91   : > { %v287_v15 = vpop.permute.xlu0 %286 }
  0x92   : > { %v297_v16 = vpop.permute.xlu1 %296 }
  0x95   : > { %v292_v17 = vpop.permute.xlu0 %291 }
  0x96   : > { %v302_v23 = vpop.permute.xlu1 %301 }
  0x99   : > { %v425_v42 = vpop.permute.xlu0 %424 }
  0x9a   : > { %v430_v40 = vpop.permute.xlu1 %429 }
  0x9d   : > { %v529_v55 = vpop.permute.xlu0 %528 }
  0x9e   : > { %v534_v56 = vrot.slane %v529_v55, %v533_v54 }
  0xf2   : > { %v718_v18 = vpop.f32.mrb[0].mxu0 }
  0xf3   : > { %v393_v19 = vadd.f32 %v718_v18, %v292_v17  ;;  %v387_v20 = vpop.f32.mrb[1].mxu0 }
  0xf4   : > { %v388_v21 = vadd.f32 %v387_v20, %v287_v15 }
  0xf5   : > { %v411_v22 = vmul.f32 0.01, %v393_v19  ;;  %vm407_vm3 = vcmp.gt.f32.partialorder %v393_v19, 0.0 }
  0xf6   : > { %v410_v24 = vmul.f32 0.01, %v388_v21  ;;  %v721_v25 = vpop.f32.mrb[2].mxu0  ;;  %vm406_vm4 = vcmp.gt.f32.partialorder %v388_v21, 0.0 }
  0xf7   : > { %v403_v26 = vadd.f32 %v721_v25, %v302_v23  ;;  %v397_v27 = vpop.f32.mrb[3].mxu0  ;;  %v415_v28 = vsel %vm407_vm3, %v393_v19, %v411_v22 }
  0xf8   : > { %v398_v29 = vadd.f32 %v397_v27, %v297_v16  ;;  %v414_v30 = vsel %vm406_vm4, %v388_v21, %v410_v24 }
  0xf9   : > { %vm409_vm6 = vcmp.gt.f32.partialorder %v403_v26, 0.0  ;;  %v413_v31 = vmul.f32 0.01, %v403_v26  ;;  %v740_v32 = vpack.c.bf16 %v415_v28, %v414_v30 }
  0xfa   : > { %vm408_vm7 = vcmp.gt.f32.partialorder %v398_v29, 0.0  ;;  %v412_v33 = vmul.f32 0.01, %v398_v29 }
  0xfb   : > { %v417_v34 = vsel %vm409_vm6, %v403_v26, %v413_v31  ;;  %741 = vmatprep.subr.bf16.mxu1 %v740_v32 }
  0xfc   : > { %v416_v35 = vsel %vm408_vm7, %v398_v29, %v412_v33  ;;  %743 = vmatpush3.bf16.msra.mxu1 %v740_v32 }
  0xfd   : > { %v744_v36 = vpack.c.bf16 %v417_v34, %v416_v35 }
  0xff   : > { %746 = vmatprep.subr.msk.bf16.mxu1 %vm745_vm9, %v744_v36 }
 0x100   : > { %749 = vmatpush3.bf16.msk.msra.mxu1 %vm745_vm9, %v744_v36 }
 0x103   : > { %731 = vmatmul.mubr.msk.f32.vlgmr.msra.gmra.mrb[0].mxu1 %vm432_vm2, %v419_v37 }
 0x1d6   : > { %v732_v41 = vpop.f32.mrb[0].mxu1 }
 0x1d7   : > { %v515_v43 = vadd.f32 %v732_v41, %v430_v40  ;;  %v509_v44 = vpop.f32.mrb[1].mxu1 }
 0x1d8   : > { %v510_v45 = vadd.f32 %v509_v44, %v425_v42 }
 0x1d9   : > { %vm519_vm12 = vcmp.gt.f32.partialorder %v515_v43, 0.0  ;;  %v521_v46 = vmul.f32 0.01, %v515_v43 }
 0x1da   : > { %vm518_vm13 = vcmp.gt.f32.partialorder %v510_v45, 0.0  ;;  %v520_v47 = vmul.f32 0.01, %v510_v45 }
 0x1db   : > { %v523_v48 = vsel %vm519_vm12, %v515_v43, %v521_v46 }
 0x1dc   : > { %v522_v49 = vsel %vm518_vm13, %v510_v45, %v520_v47 }
 0x1dd   : > { %v751_v50 = vpack.c.bf16 %v523_v48, %v522_v49 }
 0x1df   : > { %753 = vmatpush3.bf16.msk.msra.mxu0 %vm752_vm14, %v751_v50 }
 0x1e2   : > { %738 = vmatmul.mubr.msk.f32.vlgmr.msra.gmra.mrb[4].mxu0 %vm535_vm15, %v524_v51 }
 0x2b5   : > { %v609_v57 = vpop.f32.mrb[4].mxu0 }
 0x2b6   : > { %v610_v58 = vadd.f32 %v609_v57, %v534_v56  ;;  %v739_v59 = vpop.f32.mrb[5].mxu0 }
 0x2b8   : > { %613 = vst [vmem:[%s270_s17] sm:$0x1] %v610_v58 }
 0x2b9   : > { %813 = shalt.err (!%p810_p3)
}
 0x2ba   : > { %s814_s30 = scalar_lea.hbm %s1018_s21, 16  ;;  %s818_s14 = scalar_lea.hbm %s1067_s7, 64 }
 0x2bb   : > { %p815_p4 = scmp.ne.s32.totalorder %s1018_s21, %s814_s30  ;;  %p819_p9 = scmp.lt.u32.totalorder %s1018_s21, %s1067_s7 }
 0x2bc   : > { %p820_p10 = scmp.lt.u32.totalorder %s818_s14, %s814_s30  ;;  %p822_p12 = scmp.lt.u32.totalorder %s814_s30, %s1018_s21 }
 0x2bd   : > { %p816_p7 = pnand %p815_p4, %p951_p5 }
 0x2be   : > { %p821_p11 = por %p820_p10, %p819_p9 }
 0x2bf   : > { %p817_p8 = pneg %p816_p7 }
 0x2c0   : > { %p823_p13 = por %p822_p12, %p821_p11 }
 0x2c2   : > { %p824_p0 = pnand %p823_p13, %p817_p8 }
 0x2c4   : > { %827 = shalt.err (!%p824_p0)
}
 0x2c5   : > { %754 = dma.vmem_to_hbm [thread:$0]  (%p951_p5), %s1020_s18, 16, %s1018_s21, %s615_s22  }
 0x2c6 PF: > { %p760_p1 = scmp.ge.s32.totalorder %s862_s29, 2  ;;  %s639_s17 = sand.u32 1, %s850_s26  }
 0x2c7   : > { %s640_s19 = scalar_lea.sflag [#allocation4], %s639_s17 }
 0x2c8   : > { %p757_p2 = pnand %p760_p1, %p955_p6 }
 0x2ca   : > { %845 = dma.done.wait (!%p757_p2), %s640_s19, 16  }
 0x2cb   : > { %847 = vsyncadd (!%p757_p2), %s640_s19, 4294967280  ;;  %p19_p3 = scmp.ge.s32.totalorder %s938_s8, 6   ;;  %s1070_s26 = smov %s854_s27 }
 0x2cc   : > { %s1071_s27 = smov %s858_s28  ;;  %s1072_s28 = smov %s949_s11 }
 0x2cd   : > { %s1073_s29 = smov %s938_s8  ;;  %21 = sbr.rel (!%p19_p3) target bundleno = 6 (0x6), region = 83 }
 0x2d4   :  { %644 = vsyncpa [#allocation4], 1 }
 0x2d5   :  { %646 = vsyncpa [#allocation4 + $0x1], 1 }

</bundles_post_ra>
